<compile_context>
chip_gen: v6e
topology: v6e:2x2x1
jax: 0.10.0
libtpu: 0.0.40
codegen_flags: <defaults>
</compile_context>

<pallas_src>
import functools
import math

import jax
import jax.numpy as jnp
from jax import lax
from jax.experimental import pallas as pl
from jax.experimental.pallas import tpu as pltpu


# ------------------------------- Pallas kernel -------------------------------

def _mha_kernel(x_ref, wqkv_ref, wo_ref, bo_ref, o_ref, *,
                batch, seq, num_heads, d_out):
    # x_ref:    (B*S, d_in)     bf16, batch folded into the token axis
    # wqkv_ref: (d_in, 3*d_out) bf16, columns [k_w*scale | q_w | v_w]
    # wo_ref:   (d_out, d_out)  bf16
    # bo_ref:   (1, d_out)      f32
    # o_ref:    (B*S, d_out)    f32
    hd = d_out // num_heads

    # 1) Merged QKV projection: ONE MXU pass over every token of every batch
    #    element (bf16 operands, f32 accumulation).
    qkv = jnp.dot(x_ref[...], wqkv_ref[...],
                  preferred_element_type=jnp.float32)          # (B*S, 3*d_out) f32

    # 2) Regroup columns into per-(batch, head) tiles: (B*H, S, hd).
    #    Static slices + stack; all compile-time constants, all in VMEM.
    def heads(col0):
        tiles = [qkv[bi * seq:(bi + 1) * seq, col0 + h * hd: col0 + (h + 1) * hd]
                 for bi in range(batch) for h in range(num_heads)]
        return jnp.stack(tiles, axis=0).astype(jnp.bfloat16)   # (B*H, S, hd)

    q = heads(0)            # reference quirk: query = k_w(x); 1/sqrt(d_out) folded into weight
    k = heads(d_out)        # reference quirk: key   = q_w(x)
    v = heads(2 * d_out)

    # 3) Head-batched attention: one batched dot for scores, one for context,
    #    instead of 2*B*H tiny MXU ops feeding the result FIFO serially.
    scores = jnp.einsum('bqd,bkd->bqk', q, k,
                        preferred_element_type=jnp.float32)    # (B*H, S, S) f32

    # Additive causal bias (triu, diagonal=1 -> -inf), built once, broadcast
    # over all (batch, head) pairs with a single add.
    row = lax.broadcasted_iota(jnp.int32, (seq, seq), 0)
    col = lax.broadcasted_iota(jnp.int32, (seq, seq), 1)
    causal_bias = jnp.where(col > row, -jnp.inf, 0.0).astype(jnp.float32)
    scores = scores + causal_bias[None, :, :]

    # Softmax in f32 (diagonal is never masked, so every row has a finite max).
    m = jnp.max(scores, axis=-1, keepdims=True)
    e = jnp.exp(scores - m)
    w = e * pl.reciprocal(jnp.sum(e, axis=-1, keepdims=True), approx=True)
    # TODO(synk): dropout on attention weights is identity here.

    ctx = jnp.einsum('bqk,bkd->bqd', w.astype(jnp.bfloat16), v,
                     preferred_element_type=jnp.float32)       # (B*H, S, hd) f32

    # 4) Concatenate heads back to (B*S, d_out) and run ONE fused out_proj
    #    matmul (== PyTorch concat-heads-then-Linear), bias added once.
    ctx = ctx.astype(jnp.bfloat16)
    rows = [jnp.concatenate([ctx[bi * num_heads + h] for h in range(num_heads)],
                            axis=-1)                            # (S, d_out)
            for bi in range(batch)]
    ctx_flat = jnp.concatenate(rows, axis=0)                    # (B*S, d_out)

    o_ref[...] = (jnp.dot(ctx_flat, wo_ref[...],
                          preferred_element_type=jnp.float32)
                  + bo_ref[...])


# ------------------------------ kernel wrapper --------------------------------

def multi_head_attention(x, k_w, q_w, v_w, o_w, o_b, num_heads):
    b, s, d_in = x.shape
    d_out = o_w.shape[1]
    inv_sqrt_dout = 1.0 / math.sqrt(d_out)    # reference scales by 1/sqrt(d_out)

    # Merged QKV weight, column order [k_w | q_w | v_w] preserves the reference
    # swap (query <- k_w(x), key <- q_w(x)); qkv_bias=False -> no qkv bias.
    # The softmax scale is folded into the query projection weight (free).
    w_qkv = jnp.concatenate([k_w * inv_sqrt_dout, q_w, v_w], axis=1)  # (d_in, 3*d_out)

    # bf16 operands for every matmul (MXU-native), f32 accumulation in-kernel.
    x_flat = x.reshape(b * s, d_in).astype(jnp.bfloat16)
    w_qkv = w_qkv.astype(jnp.bfloat16)
    w_o = o_w.astype(jnp.bfloat16)

    kernel = functools.partial(_mha_kernel, batch=b, seq=s,
                               num_heads=num_heads, d_out=d_out)
    out = pl.pallas_call(
        kernel,
        out_shape=jax.ShapeDtypeStruct((b * s, d_out), jnp.float32),
        # Single invocation, no grid: every operand is one full VMEM-resident
        # block (x: 1 KiB, weights: ~10 KiB, out: 2 KiB) -> no per-step
        # grid/DMA overhead.  Reintroduce a "parallel" batch grid axis only
        # when per-TC work is large enough to hide per-step cost (v7x, 2 TCs).
        in_specs=[pl.BlockSpec(memory_space=pltpu.MemorySpace.VMEM)] * 4,
        out_specs=pl.BlockSpec(memory_space=pltpu.MemorySpace.VMEM),
    )(x_flat, w_qkv, w_o, o_b)
    return out.reshape(b, s, d_out)


# --------------------------- plain-JAX reference ------------------------------

def _reference_mha(x, k_w, q_w, v_w, o_w, o_b, num_heads):
    b, s, _ = x.shape
    d_out = o_w.shape[1]
    hd = d_out // num_heads
    weighted_q = x @ k_w                     # reference quirk: query from k_w
    weighted_k = x @ q_w                     # reference quirk: key from q_w
    weighted_v = x @ v_w

    def split(t):
        return t.reshape(b, s, num_heads, hd).transpose(0, 2, 1, 3)

    q, k, v = split(weighted_q), split(weighted_k), split(weighted_v)
    scores = jnp.einsum("bhqd,bhkd->bhqk", q, k)
    causal = jnp.triu(jnp.ones((s, s), dtype=bool), k=1)
    scores = jnp.where(causal[None, None], -jnp.inf, scores)
    w = jax.nn.softmax(scores * (1.0 / math.sqrt(d_out)), axis=-1)
    ctx = jnp.einsum("bhqk,bhkd->bhqd", w, v)
    ctx = ctx.transpose(0, 2, 1, 3).reshape(b, s, d_out)
    return ctx @ o_w + o_b


# ----------------------------------- main --------------------------------------

if __name__ == "__main__":
    d_in, d_out, num_heads = 32, 32, 4
    batch, seq = 2, 8

    key = jax.random.PRNGKey(0)
    kx, kk, kq, kv, ko, kb = jax.random.split(key, 6)
    x = jax.random.normal(kx, (batch, seq, d_in), jnp.float32)
    # Weights stored as (in, out), i.e. the transpose of PyTorch nn.Linear.weight.
    k_w = 0.02 * jax.random.normal(kk, (d_in, d_out), jnp.float32)
    q_w = 0.02 * jax.random.normal(kq, (d_in, d_out), jnp.float32)
    v_w = 0.02 * jax.random.normal(kv, (d_in, d_out), jnp.float32)
    o_w = 0.02 * jax.random.normal(ko, (d_out, d_out), jnp.float32)
    o_b = 0.02 * jax.random.normal(kb, (1, d_out), jnp.float32)

    fwd = jax.jit(functools.partial(multi_head_attention, num_heads=num_heads))
    out = jax.block_until_ready(fwd(x, k_w, q_w, v_w, o_w, o_b))

    ref = _reference_mha(x, k_w, q_w, v_w, o_w, o_b, num_heads)

    assert out.shape == (batch, seq, d_out)
    assert out.dtype == jnp.float32
    assert bool(jnp.all(jnp.isfinite(out)))
    # Loose-ish tolerance: bf16 matmul operands + pl.reciprocal(approx=True);
    # expected error at these magnitudes is ~1e-4.
    assert float(jnp.max(jnp.abs(out - ref))) < 5e-3
    print("KERNEL_OK")
</pallas_src>

<mosaic_0001>
module attributes {stable_mosaic.version = 11 : i64} {
  func.func @_mha_kernel(%arg0: memref<16x32xbf16, #tpu.memory_space<vmem>>, %arg1: memref<32x96xbf16, #tpu.memory_space<vmem>>, %arg2: memref<32x32xbf16, #tpu.memory_space<vmem>>, %arg3: memref<1x32xf32, #tpu.memory_space<vmem>>, %arg4: memref<16x32xf32, #tpu.memory_space<vmem>>) attributes {dimension_semantics = [], scalar_prefetch = 0 : i64, scratch_operands = 0 : i64, tpu.core_type = #tpu.core_type<tc>} {
    %c0 = arith.constant 0 : index
    %c0_0 = arith.constant 0 : index
    %0 = vector.load %arg0[%c0, %c0_0] : memref<16x32xbf16, #tpu.memory_space<vmem>>, vector<16x32xbf16>
    %c0_1 = arith.constant 0 : index
    %c0_2 = arith.constant 0 : index
    %1 = vector.load %arg1[%c0_1, %c0_2] : memref<32x96xbf16, #tpu.memory_space<vmem>>, vector<32x96xbf16>
    %cst = arith.constant dense<0.000000e+00> : vector<16x96xf32>
    %2 = tpu.matmul %0, %1, %cst {dimension_numbers = #tpu.dot_dimension_numbers<[1], [0], [0], [1], [0, 0, 1, 1], [], []>} : vector<16x32xbf16>, vector<32x96xbf16>, vector<16x96xf32> -> vector<16x96xf32>
    %3 = vector.extract_strided_slice %2 {offsets = [0, 0], sizes = [8, 8], strides = [1, 1]} : vector<16x96xf32> to vector<8x8xf32>
    %4 = vector.extract_strided_slice %2 {offsets = [0, 8], sizes = [8, 8], strides = [1, 1]} : vector<16x96xf32> to vector<8x8xf32>
    %5 = vector.extract_strided_slice %2 {offsets = [0, 16], sizes = [8, 8], strides = [1, 1]} : vector<16x96xf32> to vector<8x8xf32>
    %6 = vector.extract_strided_slice %2 {offsets = [0, 24], sizes = [8, 8], strides = [1, 1]} : vector<16x96xf32> to vector<8x8xf32>
    %7 = vector.extract_strided_slice %2 {offsets = [8, 0], sizes = [8, 8], strides = [1, 1]} : vector<16x96xf32> to vector<8x8xf32>
    %8 = vector.extract_strided_slice %2 {offsets = [8, 8], sizes = [8, 8], strides = [1, 1]} : vector<16x96xf32> to vector<8x8xf32>
    %9 = vector.extract_strided_slice %2 {offsets = [8, 16], sizes = [8, 8], strides = [1, 1]} : vector<16x96xf32> to vector<8x8xf32>
    %10 = vector.extract_strided_slice %2 {offsets = [8, 24], sizes = [8, 8], strides = [1, 1]} : vector<16x96xf32> to vector<8x8xf32>
    %11 = vector.shape_cast %3 : vector<8x8xf32> to vector<1x8x8xf32>
    %12 = vector.shape_cast %4 : vector<8x8xf32> to vector<1x8x8xf32>
    %13 = vector.shape_cast %5 : vector<8x8xf32> to vector<1x8x8xf32>
    %14 = vector.shape_cast %6 : vector<8x8xf32> to vector<1x8x8xf32>
    %15 = vector.shape_cast %7 : vector<8x8xf32> to vector<1x8x8xf32>
    %16 = vector.shape_cast %8 : vector<8x8xf32> to vector<1x8x8xf32>
    %17 = vector.shape_cast %9 : vector<8x8xf32> to vector<1x8x8xf32>
    %18 = vector.shape_cast %10 : vector<8x8xf32> to vector<1x8x8xf32>
    %19 = tpu.concatenate %11, %12, %13, %14, %15, %16, %17, %18 in 0 : vector<1x8x8xf32>, vector<1x8x8xf32>, vector<1x8x8xf32>, vector<1x8x8xf32>, vector<1x8x8xf32>, vector<1x8x8xf32>, vector<1x8x8xf32>, vector<1x8x8xf32> -> vector<8x8x8xf32>
    %20 = arith.truncf %19 : vector<8x8x8xf32> to vector<8x8x8xbf16>
    %21 = vector.extract_strided_slice %2 {offsets = [0, 32], sizes = [8, 8], strides = [1, 1]} : vector<16x96xf32> to vector<8x8xf32>
    %22 = vector.extract_strided_slice %2 {offsets = [0, 40], sizes = [8, 8], strides = [1, 1]} : vector<16x96xf32> to vector<8x8xf32>
    %23 = vector.extract_strided_slice %2 {offsets = [0, 48], sizes = [8, 8], strides = [1, 1]} : vector<16x96xf32> to vector<8x8xf32>
    %24 = vector.extract_strided_slice %2 {offsets = [0, 56], sizes = [8, 8], strides = [1, 1]} : vector<16x96xf32> to vector<8x8xf32>
    %25 = vector.extract_strided_slice %2 {offsets = [8, 32], sizes = [8, 8], strides = [1, 1]} : vector<16x96xf32> to vector<8x8xf32>
    %26 = vector.extract_strided_slice %2 {offsets = [8, 40], sizes = [8, 8], strides = [1, 1]} : vector<16x96xf32> to vector<8x8xf32>
    %27 = vector.extract_strided_slice %2 {offsets = [8, 48], sizes = [8, 8], strides = [1, 1]} : vector<16x96xf32> to vector<8x8xf32>
    %28 = vector.extract_strided_slice %2 {offsets = [8, 56], sizes = [8, 8], strides = [1, 1]} : vector<16x96xf32> to vector<8x8xf32>
    %29 = vector.shape_cast %21 : vector<8x8xf32> to vector<1x8x8xf32>
    %30 = vector.shape_cast %22 : vector<8x8xf32> to vector<1x8x8xf32>
    %31 = vector.shape_cast %23 : vector<8x8xf32> to vector<1x8x8xf32>
    %32 = vector.shape_cast %24 : vector<8x8xf32> to vector<1x8x8xf32>
    %33 = vector.shape_cast %25 : vector<8x8xf32> to vector<1x8x8xf32>
    %34 = vector.shape_cast %26 : vector<8x8xf32> to vector<1x8x8xf32>
    %35 = vector.shape_cast %27 : vector<8x8xf32> to vector<1x8x8xf32>
    %36 = vector.shape_cast %28 : vector<8x8xf32> to vector<1x8x8xf32>
    %37 = tpu.concatenate %29, %30, %31, %32, %33, %34, %35, %36 in 0 : vector<1x8x8xf32>, vector<1x8x8xf32>, vector<1x8x8xf32>, vector<1x8x8xf32>, vector<1x8x8xf32>, vector<1x8x8xf32>, vector<1x8x8xf32>, vector<1x8x8xf32> -> vector<8x8x8xf32>
    %38 = arith.truncf %37 : vector<8x8x8xf32> to vector<8x8x8xbf16>
    %39 = vector.extract_strided_slice %2 {offsets = [0, 64], sizes = [8, 8], strides = [1, 1]} : vector<16x96xf32> to vector<8x8xf32>
    %40 = vector.extract_strided_slice %2 {offsets = [0, 72], sizes = [8, 8], strides = [1, 1]} : vector<16x96xf32> to vector<8x8xf32>
    %41 = vector.extract_strided_slice %2 {offsets = [0, 80], sizes = [8, 8], strides = [1, 1]} : vector<16x96xf32> to vector<8x8xf32>
    %42 = vector.extract_strided_slice %2 {offsets = [0, 88], sizes = [8, 8], strides = [1, 1]} : vector<16x96xf32> to vector<8x8xf32>
    %43 = vector.extract_strided_slice %2 {offsets = [8, 64], sizes = [8, 8], strides = [1, 1]} : vector<16x96xf32> to vector<8x8xf32>
    %44 = vector.extract_strided_slice %2 {offsets = [8, 72], sizes = [8, 8], strides = [1, 1]} : vector<16x96xf32> to vector<8x8xf32>
    %45 = vector.extract_strided_slice %2 {offsets = [8, 80], sizes = [8, 8], strides = [1, 1]} : vector<16x96xf32> to vector<8x8xf32>
    %46 = vector.extract_strided_slice %2 {offsets = [8, 88], sizes = [8, 8], strides = [1, 1]} : vector<16x96xf32> to vector<8x8xf32>
    %47 = vector.shape_cast %39 : vector<8x8xf32> to vector<1x8x8xf32>
    %48 = vector.shape_cast %40 : vector<8x8xf32> to vector<1x8x8xf32>
    %49 = vector.shape_cast %41 : vector<8x8xf32> to vector<1x8x8xf32>
    %50 = vector.shape_cast %42 : vector<8x8xf32> to vector<1x8x8xf32>
    %51 = vector.shape_cast %43 : vector<8x8xf32> to vector<1x8x8xf32>
    %52 = vector.shape_cast %44 : vector<8x8xf32> to vector<1x8x8xf32>
    %53 = vector.shape_cast %45 : vector<8x8xf32> to vector<1x8x8xf32>
    %54 = vector.shape_cast %46 : vector<8x8xf32> to vector<1x8x8xf32>
    %55 = tpu.concatenate %47, %48, %49, %50, %51, %52, %53, %54 in 0 : vector<1x8x8xf32>, vector<1x8x8xf32>, vector<1x8x8xf32>, vector<1x8x8xf32>, vector<1x8x8xf32>, vector<1x8x8xf32>, vector<1x8x8xf32>, vector<1x8x8xf32> -> vector<8x8x8xf32>
    %56 = arith.truncf %55 : vector<8x8x8xf32> to vector<8x8x8xbf16>
    "tpu.trace_start"() <{level = 10 : i32, message = "bqd,bkd->bqk"}> : () -> ()
    %cst_3 = arith.constant dense<0.000000e+00> : vector<8x8x8xf32>
    %57 = tpu.matmul %20, %38, %cst_3 {dimension_numbers = #tpu.dot_dimension_numbers<[2], [2], [1], [1], [0, 0, 0, 1, 1, 1], [0], [0]>} : vector<8x8x8xbf16>, vector<8x8x8xbf16>, vector<8x8x8xf32> -> vector<8x8x8xf32>
    "tpu.trace_stop"() : () -> ()
    %58 = tpu.iota {dimensions = array<i32: 0>} : vector<8x8xi32>
    %59 = tpu.iota {dimensions = array<i32: 1>} : vector<8x8xi32>
    %60 = arith.cmpi sgt, %59, %58 : vector<8x8xi32>
    %cst_4 = arith.constant 0xFF800000 : f32
    %cst_5 = arith.constant 0.000000e+00 : f32
    %61 = vector.broadcast %cst_4 : f32 to vector<8x8xf32>
    %62 = vector.broadcast %cst_5 : f32 to vector<8x8xf32>
    %63 = arith.select %60, %61, %62 : vector<8x8xi1>, vector<8x8xf32>
    %64 = vector.shape_cast %63 : vector<8x8xf32> to vector<1x8x8xf32>
    %65 = vector.broadcast %64 : vector<1x8x8xf32> to vector<8x8x8xf32>
    %66 = arith.addf %57, %65 : vector<8x8x8xf32>
    %cst_6 = arith.constant dense<0xFF800000> : vector<8x8xf32>
    %67 = vector.multi_reduction <maximumf>, %66, %cst_6 [2] : vector<8x8x8xf32> to vector<8x8xf32>
    %68 = vector.shape_cast %67 : vector<8x8xf32> to vector<8x8x1xf32>
    %69 = vector.broadcast %68 : vector<8x8x1xf32> to vector<8x8x8xf32>
    %70 = arith.subf %66, %69 : vector<8x8x8xf32>
    %71 = math.exp %70 : vector<8x8x8xf32>
    %cst_7 = arith.constant dense<0.000000e+00> : vector<8x8xf32>
    %72 = vector.multi_reduction <add>, %71, %cst_7 [2] : vector<8x8x8xf32> to vector<8x8xf32>
    %73 = vector.shape_cast %72 : vector<8x8xf32> to vector<8x8x1xf32>
    %74 = tpu.reciprocal %73 {approx = true} : vector<8x8x1xf32> -> vector<8x8x1xf32>
    %75 = vector.broadcast %74 : vector<8x8x1xf32> to vector<8x8x8xf32>
    %76 = arith.mulf %71, %75 : vector<8x8x8xf32>
    %77 = arith.truncf %76 : vector<8x8x8xf32> to vector<8x8x8xbf16>
    "tpu.trace_start"() <{level = 10 : i32, message = "bqk,bkd->bqd"}> : () -> ()
    %cst_8 = arith.constant dense<0.000000e+00> : vector<8x8x8xf32>
    %78 = tpu.matmul %77, %56, %cst_8 {dimension_numbers = #tpu.dot_dimension_numbers<[2], [1], [1], [2], [0, 0, 0, 1, 1, 2], [0], [0]>} : vector<8x8x8xbf16>, vector<8x8x8xbf16>, vector<8x8x8xf32> -> vector<8x8x8xf32>
    "tpu.trace_stop"() : () -> ()
    %79 = arith.truncf %78 : vector<8x8x8xf32> to vector<8x8x8xbf16>
    %80 = vector.extract_strided_slice %79 {offsets = [0, 0, 0], sizes = [1, 8, 8], strides = [1, 1, 1]} : vector<8x8x8xbf16> to vector<1x8x8xbf16>
    %81 = vector.shape_cast %80 : vector<1x8x8xbf16> to vector<8x8xbf16>
    %82 = vector.extract_strided_slice %79 {offsets = [1, 0, 0], sizes = [1, 8, 8], strides = [1, 1, 1]} : vector<8x8x8xbf16> to vector<1x8x8xbf16>
    %83 = vector.shape_cast %82 : vector<1x8x8xbf16> to vector<8x8xbf16>
    %84 = vector.extract_strided_slice %79 {offsets = [2, 0, 0], sizes = [1, 8, 8], strides = [1, 1, 1]} : vector<8x8x8xbf16> to vector<1x8x8xbf16>
    %85 = vector.shape_cast %84 : vector<1x8x8xbf16> to vector<8x8xbf16>
    %86 = vector.extract_strided_slice %79 {offsets = [3, 0, 0], sizes = [1, 8, 8], strides = [1, 1, 1]} : vector<8x8x8xbf16> to vector<1x8x8xbf16>
    %87 = vector.shape_cast %86 : vector<1x8x8xbf16> to vector<8x8xbf16>
    %88 = tpu.concatenate %81, %83, %85, %87 in 1 : vector<8x8xbf16>, vector<8x8xbf16>, vector<8x8xbf16>, vector<8x8xbf16> -> vector<8x32xbf16>
    %89 = vector.extract_strided_slice %79 {offsets = [4, 0, 0], sizes = [1, 8, 8], strides = [1, 1, 1]} : vector<8x8x8xbf16> to vector<1x8x8xbf16>
    %90 = vector.shape_cast %89 : vector<1x8x8xbf16> to vector<8x8xbf16>
    %91 = vector.extract_strided_slice %79 {offsets = [5, 0, 0], sizes = [1, 8, 8], strides = [1, 1, 1]} : vector<8x8x8xbf16> to vector<1x8x8xbf16>
    %92 = vector.shape_cast %91 : vector<1x8x8xbf16> to vector<8x8xbf16>
    %93 = vector.extract_strided_slice %79 {offsets = [6, 0, 0], sizes = [1, 8, 8], strides = [1, 1, 1]} : vector<8x8x8xbf16> to vector<1x8x8xbf16>
    %94 = vector.shape_cast %93 : vector<1x8x8xbf16> to vector<8x8xbf16>
    %95 = vector.extract_strided_slice %79 {offsets = [7, 0, 0], sizes = [1, 8, 8], strides = [1, 1, 1]} : vector<8x8x8xbf16> to vector<1x8x8xbf16>
    %96 = vector.shape_cast %95 : vector<1x8x8xbf16> to vector<8x8xbf16>
    %97 = tpu.concatenate %90, %92, %94, %96 in 1 : vector<8x8xbf16>, vector<8x8xbf16>, vector<8x8xbf16>, vector<8x8xbf16> -> vector<8x32xbf16>
    %98 = tpu.concatenate %88, %97 in 0 : vector<8x32xbf16>, vector<8x32xbf16> -> vector<16x32xbf16>
    %c0_9 = arith.constant 0 : index
    %c0_10 = arith.constant 0 : index
    %99 = vector.load %arg2[%c0_9, %c0_10] : memref<32x32xbf16, #tpu.memory_space<vmem>>, vector<32x32xbf16>
    %cst_11 = arith.constant dense<0.000000e+00> : vector<16x32xf32>
    %100 = tpu.matmul %98, %99, %cst_11 {dimension_numbers = #tpu.dot_dimension_numbers<[1], [0], [0], [1], [0, 0, 1, 1], [], []>} : vector<16x32xbf16>, vector<32x32xbf16>, vector<16x32xf32> -> vector<16x32xf32>
    %c0_12 = arith.constant 0 : index
    %c0_13 = arith.constant 0 : index
    %101 = vector.load %arg3[%c0_12, %c0_13] : memref<1x32xf32, #tpu.memory_space<vmem>>, vector<1x32xf32>
    %102 = vector.broadcast %101 : vector<1x32xf32> to vector<16x32xf32>
    %103 = arith.addf %100, %102 : vector<16x32xf32>
    %c0_14 = arith.constant 0 : index
    %c0_15 = arith.constant 0 : index
    %104 = vector.load %arg4[%c0_14, %c0_15] : memref<16x32xf32, #tpu.memory_space<vmem>>, vector<16x32xf32>
    tpu.vector_store %arg4[%c0_14, %c0_15], %103 {strides = array<i32>} : memref<16x32xf32, #tpu.memory_space<vmem>>, vector<16x32xf32>,
    return
  }
}

</mosaic_0001>

<bundles_post_ra>
// kernel: multi_head_attention.1
= control target key start
LH: loop header
LB: loop body
LE: loop exit
PB: predicated region body
PF: predicated region fallthrough
CT: control target
= control target key end

     0   :  { %v1370_v1 = vmov 0.0   ;;  %vm1371_vm0 = vmmov 0   ;;  %s1630_s0 = inlined_call_operand.vmem [shape: bf16[16,32], index: 0, kind: input, shape index: {}]   ;;  %s1631_s1 = inlined_call_operand.vmem [shape: bf16[32,96], index: 1, kind: input, shape index: {}]   ;;  %s1632_s2 = inlined_call_operand.vmem [shape: bf16[32,32], index: 2, kind: input, shape index: {}]   ;;  %s1633_s3 = inlined_call_operand.vmem [shape: f32[1,32], index: 3, kind: input, shape index: {}]   ;;  %s1634_s4 = inlined_call_operand.hbm [shape: f32[16,32], index: 4, kind: output, shape index: {}]  }
   0x1   :  { %v1311_v0 = vld [vmem:[%s1631_s1 + $0x8] sm:$0xff]   ;;  %1187 = vmatprep.subr.bf16.mxu0 %v1370_v1  ;;  %1195 = vmatprep.subr.bf16.mxu1 %v1370_v1  ;;  %v1312_v2 = vld [vmem:[%s1631_s1] sm:$0xff]  }
   0x2   :  { %1188 = vmatpush3.bf16.msra.mxu0 %v1311_v0  ;;  %1191 = vmatprep.mubr.msk.bf16.mxu0 %vm1371_vm0, %v1370_v1 }
   0x3   :  { %1189 = vmatprep.subr.bf16.mxu0 %v1370_v1  ;;  %1197 = vmatprep.mubr.msk.bf16.mxu1 %vm1371_vm0, %v1370_v1 }
   0x4   :  { %9 = vsyncpa [#allocation3], 0  ;;  %v1313_v3 = vld [vmem:[%s1630_s0] sm:$0xff]   ;;  %vm42_vm1 = vcmask 261120   ;;  %s1372_s1 = smov 104   ;;  %s1373_s21 = smov 120   ;;  %v115_v40 = vlaneseq }
   0x5   :  { %s1374_s22 = smov 112   ;;  %s1375_s0 = smov 96   ;;  %vm124_vm2 = vcmask 64512   ;;  %vm615_vm3 = vcmask 1043456   ;;  %vm1015_vm5 = vcmask 130048   ;;  %vm1018_vm6 = vcmask 195584  }
   0x6   :  { %1190 = vmatpush3.bf16.msra.mxu0 %v1312_v2  ;;  %s1376_s23 = smov 64   ;;  %v116_v41 = vshrl.u32 %v115_v40, 7  ;;  %v118_v42 = vand.u32 127, %v115_v40  ;;  %s1377_s24 = smov 8  }
   0x7   :  { %1201 = vmatprep.subr.bf16.mxu0 %v1370_v1  ;;  %s1378_s29 = smov 16   ;;  %s1380_s6 = smov [#allocation2]  }
   0x8   :  { %vm119_vm4 = vcmp.gt.s32.totalorder %v118_v42, %v116_v41  ;;  %s1114_s7 = sshll.u32 %s1380_s6, 4  ;;  %s1115_s7 = int_to_ptr.vmem [resolvable:$true] %s1114_s7 }
   0x9   :  { %1192 = vmatmul.mubr.msk.bf16.vlgmr.msra.gmra.mxu0 %vm42_vm1, %v1313_v3  ;;  %v120_v43 = vsel %vm119_vm4, -inf, %v1370_v1  ;;  %s1348_s8 = scalar_lea.vmem %s1115_s7, 256  ;;  %p1353_p1 = scmp.lt.s32.totalorder %s1115_s7, %s1115_s7 }
   0xa   :  { %1203 = vmatprep.mubr.msk.bf16.mxu0 %vm1371_vm0, %v1370_v1  ;;  %p1349_p0 = scmp.ne.s32.totalorder %s1115_s7, %s1348_s8  ;;  %p1354_p2 = scmp.lt.s32.totalorder %s1348_s8, %s1348_s8 }
   0xc   :  { %p1355_p3 = por %p1354_p2, %p1353_p1 }
   0xe   :  { %p1356_p4 = pnand %p1355_p3, %p1349_p0 }
  0xc9   :  { %v80_v4 = vpop.f32.mrf.mxu0 }
  0xca   :  { %94 = vrot.lane.b32.xlu1 %v80_v4, %s1372_s1  ;;  %88 = vrot.lane.b32.xlu0 %v80_v4, %s1373_s21  ;;  %v107_v8 = vpack.c.bf16 %v80_v4, %v80_v4 }
  0xcb   :  { %v1193_v5 = vpop.f32.mrf.mxu0 }
  0xcd   :  { %v83_v6 = vpop.f32.mrf.mxu0 }
  0xce   :  { %91 = vrot.lane.b32.xlu0 %v80_v4, %s1374_s22  ;;  %98 = vrot.lane.b32.xlu1 %v83_v6, %s1373_s21  ;;  %v1438_v18 = vpack.c.bf16 %v83_v6, %v83_v6 }
  0xcf   :  { %v1194_v7 = vpop.f32.mrf.mxu0 }
  0xd2   :  { %101 = vrot.lane.b32.xlu0 %v83_v6, %s1374_s22  ;;  %104 = vrot.lane.b32.xlu1 %v83_v6, %s1372_s1 }
  0xd6   :  { %122 = vrot.lane.b32.xlu0 %v107_v8, %s1375_s0 }
 0x13c   :  { %v95_v9 = vpop.permute.xlu1 %94  ;;  %v89_v10 = vpop.permute.xlu0 %88 }
 0x13d   :  { %v1427_v11 = vpack.c.bf16 %v89_v10, %v89_v10  ;;  %v1430_v14 = vpack.c.bf16 %v95_v9, %v95_v9 }
 0x13f   :  { %172 = vrot.lane.b32.xlu1 %v1427_v11, %s1375_s0 }
 0x140   :  { %v92_v12 = vpop.permute.xlu0 %91  ;;  %v99_v13 = vpop.permute.xlu1 %98 }
 0x141   :  { %v1432_v15 = vpack.c.bf16 %v92_v12, %v92_v12  ;;  %v1436_v17 = vpack.c.bf16 %v99_v13, %v99_v13 }
 0x143   :  { %221 = vrot.lane.b32.xlu0 %v1432_v15, %s1375_s0  ;;  %270 = vrot.lane.b32.xlu1 %v1430_v14, %s1375_s0 }
 0x144   :  { %v102_v16 = vpop.permute.xlu0 %101  ;;  %v105_v19 = vpop.permute.xlu1 %104 }
 0x145   :  { %v1442_v21 = vpack.c.bf16 %v102_v16, %v102_v16  ;;  %v1444_v22 = vpack.c.bf16 %v105_v19, %v105_v19 }
 0x147   :  { %368 = vrot.lane.b32.xlu1 %v1436_v17, %s1375_s0  ;;  %319 = vrot.lane.b32.xlu0 %v1438_v18, %s1375_s0 }
 0x148   :  { %v123_v20 = vpop.permute.xlu0 %122 }
 0x149   :  { %v129_v23 = vsel %vm124_vm2, %v123_v20, 0 }
 0x14a   :  { %1196 = vmatpush3.bf16.xpose.msra.mxu1 %v129_v23 }
 0x14b   :  { %466 = vrot.lane.b32.xlu1 %v1444_v22, %s1375_s0  ;;  %417 = vrot.lane.b32.xlu0 %v1442_v21, %s1375_s0 }
 0x14c   :  { %1207 = vmatprep.subr.bf16.mxu1 %v1370_v1 }
 0x14f   :  { %610 = vrot.lane.b32.xlu1 %v107_v8, %s1376_s23 }
 0x151   :  { %1198 = vmatmul.mubr.msk.bf16.vlgmr.msra.gmra.mxu1 %vm124_vm2, %v107_v8 }
 0x152   :  { %1209 = vmatprep.mubr.msk.bf16.mxu1 %vm1371_vm0, %v1370_v1 }
 0x1b1   :  { %v173_v24 = vpop.permute.xlu1 %172 }
 0x1b2   :  { %v178_v25 = vsel %vm124_vm2, %v173_v24, 0 }
 0x1b3   :  { %1202 = vmatpush3.bf16.xpose.msra.mxu0 %v178_v25 }
 0x1b4   :  { %1213 = vmatprep.subr.bf16.mxu0 %v1370_v1 }
 0x1b5   :  { %v222_v26 = vpop.permute.xlu0 %221  ;;  %v271_v28 = vpop.permute.xlu1 %270 }
 0x1b6   :  { %v227_v27 = vsel %vm124_vm2, %v222_v26, 0  ;;  %v276_v29 = vsel %vm124_vm2, %v271_v28, 0 }
 0x1b7   :  { %1208 = vmatpush3.bf16.xpose.msra.mxu1 %v227_v27 }
 0x1b8   :  { %1219 = vmatprep.subr.bf16.mxu1 %v1370_v1 }
 0x1b9   :  { %v320_v30 = vpop.permute.xlu0 %319  ;;  %v369_v32 = vpop.permute.xlu1 %368 }
 0x1ba   :  { %1204 = vmatmul.mubr.msk.bf16.vlgmr.msra.gmra.mxu0 %vm124_vm2, %v1427_v11  ;;  %v325_v31 = vsel %vm124_vm2, %v320_v30, 0  ;;  %v374_v33 = vsel %vm124_vm2, %v369_v32, 0 }
 0x1bb   :  { %1214 = vmatpush3.bf16.xpose.msra.mxu0 %v276_v29  ;;  %1215 = vmatprep.mubr.msk.bf16.mxu0 %vm1371_vm0, %v1370_v1 }
 0x1bc   :  { %1225 = vmatprep.subr.bf16.mxu0 %v1370_v1 }
 0x1bd   :  { %v418_v34 = vpop.permute.xlu0 %417  ;;  %v467_v35 = vpop.permute.xlu1 %466 }
 0x1be   :  { %1210 = vmatmul.mubr.msk.bf16.vlgmr.msra.gmra.mxu1 %vm124_vm2, %v1432_v15  ;;  %v423_v36 = vsel %vm124_vm2, %v418_v34, 0  ;;  %v472_v37 = vsel %vm124_vm2, %v467_v35, 0 }
 0x1bf   :  { %1220 = vmatpush3.bf16.xpose.msra.mxu1 %v325_v31  ;;  %1221 = vmatprep.mubr.msk.bf16.mxu1 %vm1371_vm0, %v1370_v1 }
 0x1c0   :  { %1231 = vmatprep.subr.bf16.mxu1 %v1370_v1 }
 0x1c1   :  { %v611_v38 = vpop.permute.xlu1 %610 }
 0x1c2   :  { %1216 = vmatmul.mubr.msk.bf16.vlgmr.msra.gmra.mxu0 %vm124_vm2, %v1430_v14  ;;  %v617_v39 = vsel %vm615_vm3, %v611_v38, 0 }
 0x1c3   :  { %1226 = vmatpush3.bf16.xpose.msra.mxu0 %v374_v33  ;;  %1227 = vmatprep.mubr.msk.bf16.mxu0 %vm1371_vm0, %v1370_v1 }
 0x1c4   :  { %1237 = vmatprep.subr.bf16.mxu0 %v1370_v1 }
 0x1c6   :  { %1222 = vmatmul.mubr.msk.bf16.vlgmr.msra.gmra.mxu1 %vm124_vm2, %v1438_v18 }
 0x1c7   :  { %1232 = vmatpush3.bf16.xpose.msra.mxu1 %v423_v36  ;;  %1233 = vmatprep.mubr.msk.bf16.mxu1 %vm1371_vm0, %v1370_v1 }
 0x1c8   :  { %1243 = vmatprep.subr.bf16.mxu1 %v1370_v1 }
 0x1ca   :  { %1228 = vmatmul.mubr.msk.bf16.vlgmr.msra.gmra.mxu0 %vm124_vm2, %v1436_v17 }
 0x1cb   :  { %1238 = vmatpush3.bf16.xpose.msra.mxu0 %v472_v37  ;;  %1239 = vmatprep.mubr.msk.bf16.mxu0 %vm1371_vm0, %v1370_v1 }
 0x1cc   :  { %1249 = vmatprep.subr.bf16.mxu0 %v1370_v1 }
 0x1ce   :  { %1234 = vmatmul.mubr.msk.bf16.vlgmr.msra.gmra.mxu1 %vm124_vm2, %v1442_v21 }
 0x1cf   :  { %1244 = vmatpush3.bf16.msra.mxu1 %v617_v39  ;;  %1245 = vmatprep.mubr.msk.bf16.mxu1 %vm1371_vm0, %v1370_v1 }
 0x1d0   :  { %1255 = vmatprep.subr.bf16.mxu1 %v1370_v1 }
 0x1d2   :  { %1240 = vmatmul.mubr.msk.bf16.vlgmr.msra.gmra.mxu0 %vm124_vm2, %v1444_v22 }
 0x1d3   :  { %1251 = vmatprep.mubr.msk.bf16.mxu0 %vm1371_vm0, %v1370_v1 }
 0x211   :  { %v165_v44 = vpop.f32.mrf.mxu1 }
 0x212   :  { %v166_v45 = vadd.f32 %v165_v44, %v120_v43 }
 0x213   :  { %v1199_v46 = vpop.f32.mrf.mxu1 }
 0x214   :  { %v514_v47 = vsel %vm124_vm2, %v166_v45, -inf }
 0x215   :  { %v168_v48 = vpop.f32.mrf.mxu1  ;;  %515 = vmax.xlane.f32.xlu0 %v514_v47 }
 0x217   :  { %v1200_v49 = vpop.f32.mrf.mxu1 }
 0x27a   :  { %v214_v50 = vpop.f32.mrf.mxu0 }
 0x27b   :  { %v215_v51 = vadd.f32 %v214_v50, %v120_v43 }
 0x27c   :  { %v1205_v52 = vpop.f32.mrf.mxu0 }
 0x27d   :  { %v517_v53 = vsel %vm124_vm2, %v215_v51, -inf }
 0x27e   :  { %v263_v54 = vpop.f32.mrf.mxu1  ;;  %518 = vmax.xlane.f32.xlu1 %v517_v53  ;;  %v217_v55 = vpop.f32.mrf.mxu0 }
 0x27f   :  { %v264_v56 = vadd.f32 %v263_v54, %v120_v43 }
 0x280   :  { %v1206_v57 = vpop.f32.mrf.mxu0  ;;  %v1211_v58 = vpop.f32.mrf.mxu1 }
 0x281   :  { %v520_v59 = vsel %vm124_vm2, %v264_v56, -inf }
 0x282   :  { %v266_v60 = vpop.f32.mrf.mxu1  ;;  %521 = vmax.xlane.f32.xlu0 %v520_v59  ;;  %v312_v61 = vpop.f32.mrf.mxu0 }
 0x283   :  { %v313_v62 = vadd.f32 %v312_v61, %v120_v43 }
 0x284   :  { %v1212_v63 = vpop.f32.mrf.mxu1  ;;  %v1217_v0 = vpop.f32.mrf.mxu0 }
 0x285   :  { %v523_v2 = vsel %vm124_vm2, %v313_v62, -inf }
 0x286   :  { %v361_v3 = vpop.f32.mrf.mxu1  ;;  %524 = vmax.xlane.f32.xlu0 %v523_v2  ;;  %v315_v4 = vpop.f32.mrf.mxu0 }
 0x287   :  { %v1503_v5 = vadd.f32 %v361_v3, %v120_v43 }
 0x288   :  { %v1218_v6 = vpop.f32.mrf.mxu0  ;;  %v1223_v7 = vpop.f32.mrf.mxu1 }
 0x289   :  { %v526_v8 = vsel %vm124_vm2, %v1503_v5, -inf }
 0x28a   :  { %v364_v9 = vpop.f32.mrf.mxu1  ;;  %527 = vmax.xlane.f32.xlu1 %v526_v8  ;;  %v410_v10 = vpop.f32.mrf.mxu0 }
 0x28b   :  { %v1507_v12 = vadd.f32 %v410_v10, %v120_v43 }
 0x28c   :  { %v1224_v13 = vpop.f32.mrf.mxu1  ;;  %v1229_v16 = vpop.f32.mrf.mxu0 }
 0x28d   :  { %v529_v19 = vsel %vm124_vm2, %v1507_v12, -inf }
 0x28e   :  { %v459_v20 = vpop.f32.mrf.mxu1  ;;  %530 = vmax.xlane.f32.xlu0 %v529_v19  ;;  %v413_v23 = vpop.f32.mrf.mxu0 }
 0x28f   :  { %v460_v24 = vadd.f32 %v459_v20, %v120_v43 }
 0x290   :  { %v1230_v25 = vpop.f32.mrf.mxu0  ;;  %v1235_v26 = vpop.f32.mrf.mxu1 }
 0x291   :  { %v532_v27 = vsel %vm124_vm2, %v460_v24, -inf }
 0x292   :  { %v462_v28 = vpop.f32.mrf.mxu1  ;;  %533 = vmax.xlane.f32.xlu1 %v532_v27  ;;  %v508_v29 = vpop.f32.mrf.mxu0 }
 0x293   :  { %v509_v30 = vadd.f32 %v508_v29, %v120_v43 }
 0x294   :  { %v1236_v31 = vpop.f32.mrf.mxu1  ;;  %v1241_v32 = vpop.f32.mrf.mxu0 }
 0x295   :  { %v535_v33 = vsel %vm124_vm2, %v509_v30, -inf }
 0x296   :  { %536 = vmax.xlane.f32.xlu0 %v535_v33  ;;  %v511_v34 = vpop.f32.mrf.mxu0 }
 0x298   :  { %v1242_v35 = vpop.f32.mrf.mxu0 }
 0x29e   :  { %v516_v36 = vpop.xlane.xlu0 %515 }
 0x29f   :  { %v538_v37 = vsub.f32 %v166_v45, %v516_v36 }
 0x2a1   :  { %v546_v38 = vmul.f32 1.442695, %v538_v37 }
 0x2a3   :  { %707 = vrot.lane.b32.xlu1 %v1432_v15, %s1376_s23  ;;  %1316 = vpow2.f32 %v546_v38 }
 0x2a7   :  { %755 = vrot.lane.b32.xlu1 %v1430_v14, %s1376_s23 }
 0x2ac   :  { %659 = vrot.lane.b32.xlu0 %v1427_v11, %s1376_s23 }
 0x2b0   :  { %v1519_v39 = vpop.eup %1316 }
 0x2b1   :  { %v562_v40 = vsel %vm124_vm2, %v1519_v39, 0.0 }
 0x2cb   :  { %563 = vadd.xlane.f32.xlu1 %v562_v40 }
 0x307   :  { %v519_v41 = vpop.xlane.xlu1 %518 }
 0x308   :  { %v539_v42 = vsub.f32 %v215_v51, %v519_v41 }
 0x30a   :  { %v548_v43 = vmul.f32 1.442695, %v539_v42 }
 0x30b   :  { %v522_v15 = vpop.xlane.xlu0 %521 }
 0x30c   :  { %1318 = vpow2.f32 %v548_v43  ;;  %v540_v44 = vsub.f32 %v264_v56, %v522_v15 }
 0x30e   :  { %v550_v14 = vmul.f32 1.442695, %v540_v44 }
 0x30f   :  { %v525_v46 = vpop.xlane.xlu0 %524 }
 0x310   :  { %1320 = vpow2.f32 %v550_v14  ;;  %v541_v11 = vsub.f32 %v313_v62, %v525_v46 }
 0x312   :  { %v552_v47 = vmul.f32 1.442695, %v541_v11 }
 0x313   :  { %v528_v57 = vpop.xlane.xlu1 %527 }
 0x314   :  { %1322 = vpow2.f32 %v552_v47  ;;  %v542_v58 = vsub.f32 %v1503_v5, %v528_v57 }
 0x316   :  { %v554_v61 = vmul.f32 1.442695, %v542_v58 }
 0x317   :  { %v531_v49 = vpop.xlane.xlu0 %530 }
 0x318   :  { %v543_v60 = vsub.f32 %v1507_v12, %v531_v49  ;;  %1324 = vpow2.f32 %v554_v61 }
 0x319   :  { %v1523_v45 = vpop.eup %1318 }
 0x31a   :  { %v565_v48 = vsel %vm124_vm2, %v1523_v45, 0.0  ;;  %v556_v63 = vmul.f32 1.442695, %v543_v60 }
 0x31b   :  { %566 = vadd.xlane.f32.xlu0 %v565_v48  ;;  %v534_v59 = vpop.xlane.xlu1 %533 }
 0x31c   :  { %v544_v62 = vsub.f32 %v460_v24, %v534_v59  ;;  %1326 = vpow2.f32 %v556_v63 }
 0x31d   :  { %v1527_v50 = vpop.eup %1320 }
 0x31e   :  { %v568_v51 = vsel %vm124_vm2, %v1527_v50, 0.0  ;;  %v558_v0 = vmul.f32 1.442695, %v544_v62 }
 0x31f   :  { %569 = vadd.xlane.f32.xlu1 %v568_v51  ;;  %v537_v52 = vpop.xlane.xlu0 %536  ;;  %v708_v4 = vpop.permute.xlu1 %707 }
 0x320   :  { %v545_v2 = vsub.f32 %v509_v30, %v537_v52  ;;  %1328 = vpow2.f32 %v558_v0  ;;  %v713_v23 = vsel %vm615_vm3, %v708_v4, 0 }
 0x321   :  { %v1531_v53 = vpop.eup %1322 }
 0x322   :  { %v571_v54 = vsel %vm124_vm2, %v1531_v53, 0.0  ;;  %v560_v3 = vmul.f32 1.442695, %v545_v2 }
 0x323   :  { %572 = vadd.xlane.f32.xlu0 %v571_v54  ;;  %v660_v55 = vpop.permute.xlu0 %659  ;;  %v756_v6 = vpop.permute.xlu1 %755 }
 0x324   :  { %v665_v56 = vsel %vm615_vm3, %v660_v55, 0  ;;  %1330 = vpow2.f32 %v560_v3  ;;  %v761_v31 = vsel %vm615_vm3, %v756_v6, 0 }
 0x325   :  { %1250 = vmatpush3.bf16.msra.mxu0 %v665_v56 }
 0x326   :  { %1261 = vmatprep.subr.bf16.mxu0 %v1370_v1 }
 0x330   :  { %851 = vrot.lane.b32.xlu1 %v1436_v17, %s1376_s23  ;;  %v1543_v17 = vpop.eup %1324 }
 0x331   :  { %v574_v5 = vsel %vm124_vm2, %v1543_v17, 0.0 }
 0x339   :  { %803 = vrot.lane.b32.xlu0 %v1438_v18, %s1376_s23  ;;  %v1545_v18 = vpop.eup %1326 }
 0x33a   :  { %v1549_v7 = vpop.eup %1328  ;;  %v577_v10 = vsel %vm124_vm2, %v1545_v18, 0.0 }
 0x33b   :  { %v580_v9 = vsel %vm124_vm2, %v1549_v7, 0.0  ;;  %v1555_v12 = vpop.eup %1330 }
 0x33c   :  { %v583_v13 = vsel %vm124_vm2, %v1555_v12, 0.0 }
 0x354   :  { %575 = vadd.xlane.f32.xlu1 %v574_v5  ;;  %v564_v8 = vpop.xlane.xlu1 %563 }
 0x355   :  { %1332 = vrcp.f32 %v564_v8  ;;  %v1314_v8 = vld [vmem:[%s1632_s2 + $0x8] sm:$0xff]  }
 0x358   :  { %581 = vadd.xlane.f32.xlu1 %v580_v9  ;;  %578 = vadd.xlane.f32.xlu0 %v577_v10 }
 0x35c   :  { %584 = vadd.xlane.f32.xlu0 %v583_v13  ;;  %v1315_v13 = vld [vmem:[%s1632_s2] sm:$0xff]   ;;  %s1379_s2 = smov 24  }
 0x362   :  { %v1333_v16 = vpop.eup %1332 }
 0x363   :  { %v594_v19 = vmul.f32 %v1333_v16, %v1519_v39 }
 0x365   :  { %v602_v20 = vpack.c.bf16 %v594_v19, %v594_v19 }
 0x367   :  { %1246 = vmatmul.mubr.msk.bf16.vlgmr.msra.gmra.mxu1 %vm124_vm2, %v602_v20 }
 0x368   :  { %1256 = vmatpush3.bf16.msra.mxu1 %v713_v23  ;;  %1257 = vmatprep.mubr.msk.bf16.mxu1 %vm1371_vm0, %v1370_v1 }
 0x369   :  { %947 = vrot.lane.b32.xlu1 %v1444_v22, %s1376_s23  ;;  %1267 = vmatprep.subr.bf16.mxu1 %v1370_v1 }
 0x372   :  { %899 = vrot.lane.b32.xlu0 %v1442_v21, %s1376_s23 }
 0x3a4   :  { %v567_v24 = vpop.xlane.xlu0 %566 }
 0x3a5   :  { %1334 = vrcp.f32 %v567_v24 }
 0x3a8   :  { %v570_v25 = vpop.xlane.xlu1 %569 }
 0x3a9   :  { %1336 = vrcp.f32 %v570_v25 }
 0x3ac   :  { %v573_v26 = vpop.xlane.xlu0 %572  ;;  %v852_v36 = vpop.permute.xlu1 %851 }
 0x3ad   :  { %1338 = vrcp.f32 %v573_v26  ;;  %v857_v38 = vsel %vm615_vm3, %v852_v36, 0 }
 0x3b0   :  { %v804_v32 = vpop.permute.xlu0 %803 }
 0x3b1   :  { %v809_v34 = vsel %vm615_vm3, %v804_v32, 0 }
 0x3b2   :  { %v1335_v27 = vpop.eup %1334 }
 0x3b3   :  { %v595_v28 = vmul.f32 %v1335_v27, %v1523_v45 }
 0x3b5   :  { %v603_v29 = vpack.c.bf16 %v595_v28, %v595_v28 }
 0x3b6   :  { %v1337_v30 = vpop.eup %1336 }
 0x3b7   :  { %1252 = vmatmul.mubr.msk.bf16.vlgmr.msra.gmra.mxu0 %vm124_vm2, %v603_v29  ;;  %v596_v22 = vmul.f32 %v1337_v30, %v1527_v50 }
 0x3b8   :  { %1262 = vmatpush3.bf16.msra.mxu0 %v761_v31  ;;  %1263 = vmatprep.mubr.msk.bf16.mxu0 %vm1371_vm0, %v1370_v1 }
 0x3b9   :  { %v604_v21 = vpack.c.bf16 %v596_v22, %v596_v22  ;;  %1273 = vmatprep.subr.bf16.mxu0 %v1370_v1 }
 0x3ba   :  { %v1339_v33 = vpop.eup %1338 }
 0x3bb   :  { %1258 = vmatmul.mubr.msk.bf16.vlgmr.msra.gmra.mxu1 %vm124_vm2, %v604_v21  ;;  %v597_v35 = vmul.f32 %v1339_v33, %v1531_v53 }
 0x3bc   :  { %1268 = vmatpush3.bf16.msra.mxu1 %v809_v34  ;;  %1269 = vmatprep.mubr.msk.bf16.mxu1 %vm1371_vm0, %v1370_v1 }
 0x3bd   :  { %v605_v37 = vpack.c.bf16 %v597_v35, %v597_v35  ;;  %1279 = vmatprep.subr.bf16.mxu1 %v1370_v1 }
 0x3bf   :  { %1264 = vmatmul.mubr.msk.bf16.vlgmr.msra.gmra.mxu0 %vm124_vm2, %v605_v37 }
 0x3c0   :  { %1274 = vmatpush3.bf16.msra.mxu0 %v857_v38  ;;  %1275 = vmatprep.mubr.msk.bf16.mxu0 %vm1371_vm0, %v1370_v1 }
 0x3c1   :  { %1285 = vmatprep.subr.bf16.mxu0 %v1370_v1 }
 0x3dd   :  { %v576_v39 = vpop.xlane.xlu1 %575 }
 0x3de   :  { %1340 = vrcp.f32 %v576_v39 }
 0x3e1   :  { %v582_v40 = vpop.xlane.xlu1 %581  ;;  %v579_v41 = vpop.xlane.xlu0 %578 }
 0x3e2   :  { %1342 = vrcp.f32 %v582_v40 }
 0x3e3   :  { %1344 = vrcp.f32 %v579_v41 }
 0x3e5   :  { %v585_v42 = vpop.xlane.xlu0 %584  ;;  %v948_v48 = vpop.permute.xlu1 %947 }
 0x3e6   :  { %1346 = vrcp.f32 %v585_v42  ;;  %v953_v52 = vsel %vm615_vm3, %v948_v48, 0  ;;  %v1145_v48 = vld [vmem:[%s1633_s3] ss:$0 sm:$0xff] }
 0x3e9   :  { %v900_v44 = vpop.permute.xlu0 %899 }
 0x3ea   :  { %v905_v47 = vsel %vm615_vm3, %v900_v44, 0 }
 0x3eb   :  { %v1341_v43 = vpop.eup %1340 }
 0x3ec   :  { %v598_v15 = vmul.f32 %v1341_v43, %v1543_v17 }
 0x3ee   :  { %v606_v14 = vpack.c.bf16 %v598_v15, %v598_v15 }
 0x3ef   :  { %v1343_v46 = vpop.eup %1342 }
 0x3f0   :  { %v1345_v11 = vpop.eup %1344  ;;  %1270 = vmatmul.mubr.msk.bf16.vlgmr.msra.gmra.mxu1 %vm124_vm2, %v606_v14  ;;  %v600_v49 = vmul.f32 %v1343_v46, %v1549_v7 }
 0x3f1   :  { %1280 = vmatpush3.bf16.msra.mxu1 %v905_v47  ;;  %v599_v45 = vmul.f32 %v1345_v11, %v1545_v18  ;;  %1281 = vmatprep.mubr.msk.bf16.mxu1 %vm1371_vm0, %v1370_v1 }
 0x3f2   :  { %1291 = vmatprep.subr.bf16.mxu1 %v1370_v1  ;;  %v608_v53 = vpack.c.bf16 %v600_v49, %v600_v49 }
 0x3f3   :  { %v607_v50 = vpack.c.bf16 %v599_v45, %v599_v45  ;;  %v1347_v51 = vpop.eup %1346 }
 0x3f4   :  { %v601_v54 = vmul.f32 %v1347_v51, %v1555_v12 }
 0x3f5   :  { %1276 = vmatmul.mubr.msk.bf16.vlgmr.msra.gmra.mxu0 %vm124_vm2, %v607_v50 }
 0x3f6   :  { %1286 = vmatpush3.bf16.msra.mxu0 %v953_v52  ;;  %1287 = vmatprep.mubr.msk.bf16.mxu0 %vm1371_vm0, %v1370_v1  ;;  %v609_v55 = vpack.c.bf16 %v601_v54, %v601_v54 }
 0x3f8   :  { %1282 = vmatmul.mubr.msk.bf16.vlgmr.msra.gmra.mxu1 %vm124_vm2, %v608_v53 }
 0x3f9   :  { %1295 = vmatprep.mubr.msk.bf16.mxu1 %vm1371_vm0, %v1370_v1  ;;  %1292 = vmatpush3.bf16.msra.mxu1 %v1314_v8 }
 0x3fa   :  { %1293 = vmatprep.subr.bf16.mxu1 %v1370_v1 }
 0x3fd   :  { %1288 = vmatmul.mubr.msk.bf16.vlgmr.msra.gmra.mxu0 %vm124_vm2, %v609_v55  ;;  %1294 = vmatpush3.bf16.msra.mxu1 %v1315_v13 }
 0x427   :  { %v1604_v56 = vpop.f32.mrf.mxu1 }
 0x428   :  { %v995_v42 = vpack.c.bf16 %v1604_v56, %v1604_v56 }
 0x429   :  { %v1247_v57 = vpop.f32.mrf.mxu1 }
 0x42b   :  { %v656_v58 = vpop.f32.mrf.mxu1 }
 0x42d   :  { %v1248_v59 = vpop.f32.mrf.mxu1 }
 0x477   :  { %v701_v60 = vpop.f32.mrf.mxu0 }
 0x478   :  { %v996_v61 = vpack.c.bf16 %v701_v60, %v701_v60 }
 0x479   :  { %v1253_v62 = vpop.f32.mrf.mxu0 }
 0x47a   :  { %1004 = vrot.lane.b32.xlu0 %v996_v61, %s1377_s24 }
 0x47b   :  { %v704_v63 = vpop.f32.mrf.mxu0  ;;  %v749_v0 = vpop.f32.mrf.mxu1 }
 0x47c   :  { %v997_v27 = vpack.c.bf16 %v749_v0, %v749_v0 }
 0x47d   :  { %v1254_v2 = vpop.f32.mrf.mxu0  ;;  %v1259_v3 = vpop.f32.mrf.mxu1 }
 0x47f   :  { %v752_v4 = vpop.f32.mrf.mxu1  ;;  %v797_v17 = vpop.f32.mrf.mxu0 }
 0x480   :  { %v998_v33 = vpack.c.bf16 %v797_v17, %v797_v17 }
 0x481   :  { %v1260_v6 = vpop.f32.mrf.mxu1  ;;  %v1265_v18 = vpop.f32.mrf.mxu0 }
 0x483   :  { %v800_v5 = vpop.f32.mrf.mxu0 }
 0x485   :  { %v1266_v7 = vpop.f32.mrf.mxu0 }
 0x4b0   :  { %v845_v9 = vpop.f32.mrf.mxu1 }
 0x4b1   :  { %v999_v38 = vpack.c.bf16 %v845_v9, %v845_v9 }
 0x4b2   :  { %v1271_v10 = vpop.f32.mrf.mxu1 }
 0x4b4   :  { %v848_v12 = vpop.f32.mrf.mxu1 }
 0x4b5   :  { %v893_v16 = vpop.f32.mrf.mxu0 }
 0x4b6   :  { %v1000_v19 = vpack.c.bf16 %v893_v16, %v893_v16  ;;  %v1272_v20 = vpop.f32.mrf.mxu1 }
 0x4b7   :  { %v1277_v23 = vpop.f32.mrf.mxu0 }
 0x4b8   :  { %1022 = vrot.lane.b32.xlu0 %v1000_v19, %s1377_s24  ;;  %v941_v24 = vpop.f32.mrf.mxu1 }
 0x4b9   :  { %v896_v25 = vpop.f32.mrf.mxu0  ;;  %v1001_v26 = vpack.c.bf16 %v941_v24, %v941_v24 }
 0x4ba   :  { %v1283_v28 = vpop.f32.mrf.mxu1 }
 0x4bb   :  { %v1278_v29 = vpop.f32.mrf.mxu0  ;;  %1025 = vrot.lane.b32.xlu1 %v1001_v26, %s1378_s29 }
 0x4bc   :  { %1007 = vrot.lane.b32.xlu0 %v997_v27, %s1378_s29  ;;  %v944_v1 = vpop.f32.mrf.mxu1 }
 0x4bd   :  { %v989_v30 = vpop.f32.mrf.mxu0 }
 0x4be   :  { %v1002_v31 = vpack.c.bf16 %v989_v30, %v989_v30  ;;  %v1284_v22 = vpop.f32.mrf.mxu1 }
 0x4bf   :  { %v1289_v32 = vpop.f32.mrf.mxu0 }
 0x4c0   :  { %1028 = vrot.lane.b32.xlu1 %v1002_v31, %s1379_s2 }
 0x4c1   :  { %v992_v21 = vpop.f32.mrf.mxu0 }
 0x4c3   :  { %v1290_v34 = vpop.f32.mrf.mxu0 }
 0x4c4   :  { %1010 = vrot.lane.b32.xlu1 %v998_v33, %s1379_s2 }
 0x4ec   :  { %v1005_v35 = vpop.permute.xlu0 %1004 }
 0x4ed   :  { %v1014_v44 = vsel %vm124_vm2, %v995_v42, %v1005_v35 }
 0x52a   :  { %v1023_v36 = vpop.permute.xlu0 %1022 }
 0x52b   :  { %v1032_v39 = vsel %vm124_vm2, %v999_v38, %v1023_v36 }
 0x52d   :  { %v1026_v37 = vpop.permute.xlu1 %1025 }
 0x52e   :  { %v1034_v40 = vsel %vm1015_vm5, %v1032_v39, %v1026_v37  ;;  %v1008_v43 = vpop.permute.xlu0 %1007 }
 0x52f   :  { %v1017_v14 = vsel %vm1015_vm5, %v1014_v44, %v1008_v43 }
 0x532   :  { %v1029_v41 = vpop.permute.xlu1 %1028 }
 0x533   :  { %v1036_v15 = vsel %vm1018_vm6, %v1034_v40, %v1029_v41 }
 0x534   :  { %v1038_v46 = vrot.slane %v1036_v15, 4 }
 0x536   :  { %v1011_v11 = vpop.permute.xlu1 %1010 }
 0x537   :  { %v1020_v47 = vsel %vm1018_vm6, %v1017_v14, %v1011_v11 }
 0x538   :  { %v1040_v45 = vsel %vm615_vm3, %v1020_v47, %v1038_v46 }
 0x539   :  { %1296 = vmatmul.mubr.msk.bf16.vlgmr.msra.gmra.mxu1 %vm42_vm1, %v1040_v45 }
 0x5f9   :  { %v1100_v49 = vpop.f32.mrf.mxu1 }
 0x5fa   :  { %v1101_v50 = vadd.f32 %v1145_v48, %v1100_v49 }
 0x5fb   :  { %v1297_v51 = vpop.f32.mrf.mxu1 }
 0x5fc   :  { %1107 = vst.msk [vmem:[#allocation2] sm:$0xff] %vm42_vm1, %v1101_v50 }
 0x5fd   :  { %v1103_v52 = vpop.f32.mrf.mxu1 }
 0x5fe   :  { %v1104_v53 = vadd.f32 %v1145_v48, %v1103_v52 }
 0x5ff   :  { %v1298_v54 = vpop.f32.mrf.mxu1 }
 0x600   :  { %1108 = vst.msk [vmem:[#allocation2 + $0x8] sm:$0xff] %vm42_vm1, %v1104_v53 }
 0x601   :  { %1359 = shalt.err (!%p1356_p4)
}
 0x602   :  { %s1381_s3 = smov 128  }
 0x603   :  { %1120 = dma.vmem_to_hbm [thread:$0]  %s1115_s7, 256, %s1634_s4, [#allocation3], %s1381_s3, %s1381_s3, %s1377_s24  }
 0x604   :  { %1368 = dma.done.wait [#allocation3], 256  }
 0x605   :  { %1369 = vsyncadd [#allocation3], 4294967040 }
 0x606   :  { %1124 = vsyncpa [#allocation3], 1 }

</bundles_post_ra>
